<compile_context>
chip_gen: v5e
topology: v5e:2x2
jax: 0.10.0
libtpu: 0.0.40
codegen_flags: <defaults>
</compile_context>

<pallas_src>
import functools
import math

import jax
import jax.numpy as jnp
from jax.experimental import pallas as pl
from jax.experimental.pallas import tpu as pltpu


def _cdiv(a, b):
    return -(-a // b)


def _round_up(x, m):
    return _cdiv(x, m) * m


def _pit_partial_kernel(o0_ref, o1_ref, s1_ref, s2_ref, part_ref, *,
                        loss_type: str, acc_rows: int):
    """Accumulate per-lane partial error sums for both speaker permutations.

    o0_ref/o1_ref: (tile_b, tile_r, 128) output-channel blocks
    s1_ref/s2_ref: (tile_b, tile_r, 128) speaker blocks
    part_ref:      (1, 2, acc_rows, 128) f32 accumulator, revisited across the
                   batch / row reduction grid axes.
    """
    b = pl.program_id(1)
    i = pl.program_id(2)

    @pl.when(jnp.logical_and(b == 0, i == 0))
    def _():
        part_ref[...] = jnp.zeros_like(part_ref)

    o0 = o0_ref[...].astype(jnp.float32)
    o1 = o1_ref[...].astype(jnp.float32)
    s1 = s1_ref[...].astype(jnp.float32)
    s2 = s2_ref[...].astype(jnp.float32)

    if loss_type == "mse":
        err = lambda a, c: (a - c) * (a - c)
    else:  # "mae"
        err = lambda a, c: jnp.abs(a - c)

    # permutation 1: (ch0 vs spk1) + (ch1 vs spk2); permutation 2: swapped.
    e1 = err(o0, s1) + err(o1, s2)            # (tile_b, tile_r, 128) f32
    e2 = err(o0, s2) + err(o1, s1)

    # Reduce leading dims with pure VPU adds into acc_rows independent
    # sublane groups (no cross-lane XLU work, shorter dependency chain).
    part_ref[0, 0] += jnp.sum(e1.reshape(-1, acc_rows, 128), axis=0)
    part_ref[0, 1] += jnp.sum(e2.reshape(-1, acc_rows, 128), axis=0)


def _plan_tiling(B, R, itemsize, row_align, max_tile_rows=None):
    """Generation-aware tile planning.  Returns (plan_dict, tile_b, n_b, vmem_cap)."""
    try:
        vmem_cap = int(pltpu.get_tpu_info().vmem_capacity_bytes)
    except Exception:
        vmem_cap = 64 << 20  # conservative default = v7x per-TensorCore VMEM
    budget = max(16 << 20, min(vmem_cap // 2, 64 << 20))

    # Per streamed (1, 128) row we hold: 4 operand blocks double-buffered
    # (8 * itemsize bytes) plus ~6 f32 in-kernel temporaries (24 bytes).
    bytes_per_row = 128 * (8 * itemsize + 24)
    max_rows_total = max(row_align, budget // bytes_per_row)

    # Batch tiling: whole batch per block when it fits, else split B on its
    # own grid axis.
    if B * row_align <= max_rows_total:
        tile_b = B
    else:
        tile_b = min(B, max(1, max_rows_total // row_align))
    n_b = _cdiv(B, tile_b)

    cap_rows = max(row_align,
                   (max_rows_total // tile_b) // row_align * row_align)
    if max_tile_rows is not None:
        cap_rows = min(cap_rows,
                       max(row_align, (max_tile_rows // row_align) * row_align))

    R_aligned = _round_up(max(R, 1), row_align)

    def _plan(n_par):
        rows_pp = _round_up(_cdiv(R_aligned, n_par), row_align)
        tile_r = min(cap_rows, rows_pp)
        n_tiles = _cdiv(rows_pp, tile_r)
        return dict(n_par=n_par, n_tiles=n_tiles, tile_r=tile_r,
                    total_rows=n_par * n_tiles * tile_r,
                    steps=n_par * n_tiles)

    plan = _plan(1)
    # Megacore split (v7x has 2 TCs): only when it keeps full-size tiles and
    # costs no extra grid steps / padding -> free on 1-TC v5e/v6e.
    if R_aligned >= 2 * cap_rows:
        alt = _plan(2)
        if alt["steps"] <= plan["steps"] and alt["total_rows"] <= plan["total_rows"]:
            plan = alt
    return plan, tile_b, n_b, vmem_cap


def pit_loss(output, speaker_1, speaker_2, *, loss: str = "mse",
             max_tile_rows=None):
    """PIT 2-speaker loss. output: [B, 2, ...]; speakers: [B, ...].

    Returns {'loss': scalar} = min over the two channel<->speaker permutations
    of (mean_err(ch_a, spk_1) + mean_err(ch_b, spk_2)).
    """
    assert loss in ("mse", "mae")
    B = output.shape[0]
    assert output.shape[1] == 2
    T = math.prod(output.shape[2:])
    assert math.prod(speaker_1.shape[1:]) == T
    assert math.prod(speaker_2.shape[1:]) == T

    itemsizes = [jnp.dtype(x.dtype).itemsize for x in (output, speaker_1, speaker_2)]
    itemsize = max(itemsizes)
    # Sublane packing: 8 rows for 32-bit, 16 for 16-bit, 32 for 8-bit dtypes.
    row_align = 8 * max(1, 4 // min(itemsizes))

    R = _cdiv(T, 128)
    plan, tile_b, n_b, vmem_cap = _plan_tiling(B, R, itemsize, row_align,
                                               max_tile_rows)
    n_par, n_tiles, tile_r = plan["n_par"], plan["n_tiles"], plan["tile_r"]
    R_final = plan["total_rows"]
    B_pad = n_b * tile_b

    # Contiguous reshapes; zero-pad rows/batch (zeros add 0 to both error sums,
    # and we divide by the true element count at the end).
    o3 = output.reshape(B, 2, T)
    s1f = speaker_1.reshape(B, T)
    s2f = speaker_2.reshape(B, T)
    T_final = R_final * 128
    if T_final != T:
        pt = T_final - T
        o3 = jnp.pad(o3, ((0, 0), (0, 0), (0, pt)))
        s1f = jnp.pad(s1f, ((0, 0), (0, pt)))
        s2f = jnp.pad(s2f, ((0, 0), (0, pt)))
    if B_pad != B:
        pb = B_pad - B
        o3 = jnp.pad(o3, ((0, pb), (0, 0), (0, 0)))
        s1f = jnp.pad(s1f, ((0, pb), (0, 0)))
        s2f = jnp.pad(s2f, ((0, pb), (0, 0)))

    o4 = o3.reshape(B_pad, 2, R_final, 128)
    s1r = s1f.reshape(B_pad, R_final, 128)
    s2r = s2f.reshape(B_pad, R_final, 128)

    rows_block = tile_b * tile_r
    acc_rows = 32 if rows_block % 32 == 0 else (16 if rows_block % 16 == 0 else 8)

    # VMEM model: double-buffered input blocks + f32 in-kernel temporaries,
    # plus 25% + 4 MiB headroom, never above physical capacity.
    est_bytes = rows_block * 128 * (8 * itemsize + 24)
    vmem_limit = int(max(16 << 20,
                         min(vmem_cap - (2 << 20),
                             max(32 << 20,
                                 est_bytes + est_bytes // 4 + (4 << 20)))))

    kernel = functools.partial(_pit_partial_kernel, loss_type=loss,
                               acc_rows=acc_rows)

    def ch_map(ch):
        # Squeezed channel dim: block size 1 -> index is the element index.
        return lambda p, b, i: (b, ch, p * n_tiles + i, 0)

    def spk_map(p, b, i):
        return (b, p * n_tiles + i, 0)

    partials = pl.pallas_call(
        kernel,
        out_shape=jax.ShapeDtypeStruct((n_par, 2, acc_rows, 128), jnp.float32),
        grid_spec=pltpu.PrefetchScalarGridSpec(
            num_scalar_prefetch=0,
            grid=(n_par, n_b, n_tiles),
            in_specs=[
                pl.BlockSpec((tile_b, None, tile_r, 128), ch_map(0)),
                pl.BlockSpec((tile_b, None, tile_r, 128), ch_map(1)),
                pl.BlockSpec((tile_b, tile_r, 128), spk_map),
                pl.BlockSpec((tile_b, tile_r, 128), spk_map),
            ],
            out_specs=pl.BlockSpec((1, 2, acc_rows, 128),
                                   lambda p, b, i: (p, 0, 0, 0)),
        ),
        compiler_params=pltpu.CompilerParams(
            dimension_semantics=("parallel", "arbitrary", "arbitrary"),
            vmem_limit_bytes=vmem_limit),
    )(o4, o4, s1r, s2r)   # same output array, one BlockSpec per channel

    # Tiny final reduce in JAX: sum partials, pick best permutation, scale.
    sums = jnp.sum(partials, axis=(0, 2, 3))            # [perm1_sum, perm2_sum]
    loss_val = jnp.minimum(sums[0], sums[1]) / jnp.float32(B * T)
    return {"loss": loss_val}


class Loss:
    """JAX/Pallas analogue of the PyTorch ``Loss`` module."""

    def __init__(self, loss: str = "mse", output: str = "wav"):
        assert loss in ("mse", "mae")
        assert output in ("spec", "wav")
        self.loss = loss
        self.output_key = f"output_{output}"
        self.speaker_1_key = f"speaker_1_{output}"
        self.speaker_2_key = f"speaker_2_{output}"

    def __call__(self, **batch):
        return pit_loss(batch[self.output_key],
                        batch[self.speaker_1_key],
                        batch[self.speaker_2_key],
                        loss=self.loss)


def _reference(output, s1, s2, loss):
    output = output.astype(jnp.float32)
    s1 = s1.astype(jnp.float32)
    s2 = s2.astype(jnp.float32)
    err = (lambda a, b: jnp.mean((a - b) ** 2)) if loss == "mse" \
        else (lambda a, b: jnp.mean(jnp.abs(a - b)))
    B = output.shape[0]
    o0 = output[:, 0].reshape(B, -1)
    o1 = output[:, 1].reshape(B, -1)
    s1 = s1.reshape(B, -1)
    s2 = s2.reshape(B, -1)
    l1 = err(o0, s1) + err(o1, s2)
    l2 = err(o0, s2) + err(o1, s1)
    return jnp.minimum(l1, l2)


if __name__ == "__main__":
    key = jax.random.PRNGKey(0)
    ks = jax.random.split(key, 15)
    B = 2

    # "wav": output [B, 2, T], speakers [B, T]
    T = 2048
    out_wav = jax.random.normal(ks[0], (B, 2, T), dtype=jnp.float32)
    s1_wav = jax.random.normal(ks[1], (B, T), dtype=jnp.float32)
    s2_wav = jax.random.normal(ks[2], (B, T), dtype=jnp.float32)

    # "spec": output [B, 2, F, Tf], speakers [B, F, Tf]
    F, Tf = 8, 128
    out_spec = jax.random.normal(ks[3], (B, 2, F, Tf), dtype=jnp.float32)
    s1_spec = jax.random.normal(ks[4], (B, F, Tf), dtype=jnp.float32)
    s2_spec = jax.random.normal(ks[5], (B, F, Tf), dtype=jnp.float32)

    # Larger case with max_tile_rows=8 -> grid (2, 1, 2): exercises the
    # parallel axis and multi-step accumulation on the reduction axis.
    T_big = 128 * 32
    out_big = jax.random.normal(ks[6], (B, 2, T_big), dtype=jnp.float32)
    s1_big = jax.random.normal(ks[7], (B, T_big), dtype=jnp.float32)
    s2_big = jax.random.normal(ks[8], (B, T_big), dtype=jnp.float32)

    # bf16 inputs (16-row sublane packing path, f32 accumulation in-kernel).
    out_bf = jax.random.normal(ks[9], (B, 2, T), dtype=jnp.bfloat16)
    s1_bf = jax.random.normal(ks[10], (B, T), dtype=jnp.bfloat16)
    s2_bf = jax.random.normal(ks[11], (B, T), dtype=jnp.bfloat16)

    # Ragged length (not a multiple of 128) -> exercises zero padding.
    T_rag = 1000
    out_rag = jax.random.normal(ks[12], (B, 2, T_rag), dtype=jnp.float32)
    s1_rag = jax.random.normal(ks[13], (B, T_rag), dtype=jnp.float32)
    s2_rag = jax.random.normal(ks[14], (B, T_rag), dtype=jnp.float32)

    ok = True
    for loss_type in ("mse", "mae"):
        fn = jax.jit(functools.partial(pit_loss, loss=loss_type))
        for (o, a, b) in ((out_wav, s1_wav, s2_wav),
                          (out_spec, s1_spec, s2_spec),
                          (out_rag, s1_rag, s2_rag)):
            got = jax.block_until_ready(fn(o, a, b)["loss"])
            ref = _reference(o, a, b, loss_type)
            ok &= bool(jnp.allclose(got, ref, rtol=1e-5, atol=1e-5))

        got = jax.block_until_ready(fn(out_bf, s1_bf, s2_bf)["loss"])
        ref = _reference(out_bf, s1_bf, s2_bf, loss_type)
        ok &= bool(jnp.allclose(got, ref, rtol=1e-4, atol=1e-4))

        fn_tiled = jax.jit(functools.partial(pit_loss, loss=loss_type,
                                             max_tile_rows=8))
        got = jax.block_until_ready(fn_tiled(out_big, s1_big, s2_big)["loss"])
        ref = _reference(out_big, s1_big, s2_big, loss_type)
        ok &= bool(jnp.allclose(got, ref, rtol=1e-5, atol=1e-5))

    # Module-style call for spec parity.
    mod = Loss(loss="mse", output="wav")
    got = jax.block_until_ready(
        mod(output_wav=out_wav, speaker_1_wav=s1_wav, speaker_2_wav=s2_wav)["loss"])
    ok &= bool(jnp.allclose(got, _reference(out_wav, s1_wav, s2_wav, "mse"),
                            rtol=1e-5, atol=1e-5))

    print("KERNEL_OK" if ok else "KERNEL_MISMATCH")
</pallas_src>

<mosaic_0001>
module attributes {stable_mosaic.version = 11 : i64} {
  func.func @_pit_partial_kernel(%arg0: i32, %arg1: i32, %arg2: i32, %arg3: memref<2x1x16x128xf32, #tpu.memory_space<vmem>>, %arg4: memref<2x1x16x128xf32, #tpu.memory_space<vmem>>, %arg5: memref<2x16x128xf32, #tpu.memory_space<vmem>>, %arg6: memref<2x16x128xf32, #tpu.memory_space<vmem>>, %arg7: memref<1x2x32x128xf32, #tpu.memory_space<vmem>>) attributes {dimension_semantics = [#tpu.dimension_semantics<parallel>, #tpu.dimension_semantics<arbitrary>, #tpu.dimension_semantics<arbitrary>], iteration_bounds = array<i64: 1, 1, 1>, scalar_prefetch = 0 : i64, scratch_operands = 0 : i64, tpu.core_type = #tpu.core_type<tc>, window_params = [{transform_indices = @transform_0, window_bounds = array<i64: 2, 1, 16, 128>}, {transform_indices = @transform_1, window_bounds = array<i64: 2, 1, 16, 128>}, {transform_indices = @transform_2, window_bounds = array<i64: 2, 16, 128>}, {transform_indices = @transform_3, window_bounds = array<i64: 2, 16, 128>}, {transform_indices = @transform_4, window_bounds = array<i64: 1, 2, 32, 128>}]} {
    %c0_i32 = arith.constant 0 : i32
    %0 = arith.cmpi eq, %arg1, %c0_i32 : i32
    %c0_i32_0 = arith.constant 0 : i32
    %1 = arith.cmpi eq, %arg2, %c0_i32_0 : i32
    %2 = arith.andi %0, %1 : i1
    %3 = arith.extui %2 : i1 to i32
    %c0_i32_1 = arith.constant 0 : i32
    %4 = arith.cmpi ne, %3, %c0_i32_1 : i32
    scf.if %4 {
      %cst_31 = arith.constant 0.000000e+00 : f32
      %41 = vector.broadcast %cst_31 : f32 to vector<1x2x32x128xf32>
      %c0_32 = arith.constant 0 : index
      %c0_33 = arith.constant 0 : index
      %c0_34 = arith.constant 0 : index
      %c0_35 = arith.constant 0 : index
      %42 = vector.load %arg7[%c0_32, %c0_33, %c0_34, %c0_35] : memref<1x2x32x128xf32, #tpu.memory_space<vmem>>, vector<1x2x32x128xf32>
      tpu.vector_store %arg7[%c0_32, %c0_33, %c0_34, %c0_35], %41 {strides = array<i32>} : memref<1x2x32x128xf32, #tpu.memory_space<vmem>>, vector<1x2x32x128xf32>,
    } else {
    }
    %c0 = arith.constant 0 : index
    %c0_2 = arith.constant 0 : index
    %c0_3 = arith.constant 0 : index
    %c0_4 = arith.constant 0 : index
    %5 = vector.load %arg3[%c0, %c0_2, %c0_3, %c0_4] : memref<2x1x16x128xf32, #tpu.memory_space<vmem>>, vector<2x1x16x128xf32>
    %6 = vector.shape_cast %5 : vector<2x1x16x128xf32> to vector<2x16x128xf32>
    %c0_5 = arith.constant 0 : index
    %c0_6 = arith.constant 0 : index
    %c0_7 = arith.constant 0 : index
    %c0_8 = arith.constant 0 : index
    %7 = vector.load %arg4[%c0_5, %c0_6, %c0_7, %c0_8] : memref<2x1x16x128xf32, #tpu.memory_space<vmem>>, vector<2x1x16x128xf32>
    %8 = vector.shape_cast %7 : vector<2x1x16x128xf32> to vector<2x16x128xf32>
    %c0_9 = arith.constant 0 : index
    %c0_10 = arith.constant 0 : index
    %c0_11 = arith.constant 0 : index
    %9 = vector.load %arg5[%c0_9, %c0_10, %c0_11] : memref<2x16x128xf32, #tpu.memory_space<vmem>>, vector<2x16x128xf32>
    %c0_12 = arith.constant 0 : index
    %c0_13 = arith.constant 0 : index
    %c0_14 = arith.constant 0 : index
    %10 = vector.load %arg6[%c0_12, %c0_13, %c0_14] : memref<2x16x128xf32, #tpu.memory_space<vmem>>, vector<2x16x128xf32>
    %11 = arith.subf %6, %9 : vector<2x16x128xf32>
    %12 = arith.subf %6, %9 : vector<2x16x128xf32>
    %13 = arith.mulf %11, %12 : vector<2x16x128xf32>
    %14 = arith.subf %8, %10 : vector<2x16x128xf32>
    %15 = arith.subf %8, %10 : vector<2x16x128xf32>
    %16 = arith.mulf %14, %15 : vector<2x16x128xf32>
    %17 = arith.addf %13, %16 : vector<2x16x128xf32>
    %18 = arith.subf %6, %10 : vector<2x16x128xf32>
    %19 = arith.subf %6, %10 : vector<2x16x128xf32>
    %20 = arith.mulf %18, %19 : vector<2x16x128xf32>
    %21 = arith.subf %8, %9 : vector<2x16x128xf32>
    %22 = arith.subf %8, %9 : vector<2x16x128xf32>
    %23 = arith.mulf %21, %22 : vector<2x16x128xf32>
    %24 = arith.addf %20, %23 : vector<2x16x128xf32>
    %c0_15 = arith.constant 0 : index
    %c0_16 = arith.constant 0 : index
    %c0_17 = arith.constant 0 : index
    %c0_18 = arith.constant 0 : index
    %25 = vector.load %arg7[%c0_15, %c0_16, %c0_17, %c0_18] : memref<1x2x32x128xf32, #tpu.memory_space<vmem>>, vector<1x1x32x128xf32>
    %26 = vector.shape_cast %25 : vector<1x1x32x128xf32> to vector<32x128xf32>
    %27 = vector.shape_cast %17 : vector<2x16x128xf32> to vector<1x32x128xf32>
    %cst = arith.constant dense<0.000000e+00> : vector<32x128xf32>
    %28 = vector.multi_reduction <add>, %27, %cst [0] : vector<1x32x128xf32> to vector<32x128xf32>
    %29 = arith.addf %26, %28 : vector<32x128xf32>
    %c0_19 = arith.constant 0 : index
    %c0_20 = arith.constant 0 : index
    %c0_21 = arith.constant 0 : index
    %c0_22 = arith.constant 0 : index
    %30 = vector.load %arg7[%c0_19, %c0_20, %c0_21, %c0_22] : memref<1x2x32x128xf32, #tpu.memory_space<vmem>>, vector<1x1x32x128xf32>
    %31 = vector.shape_cast %30 : vector<1x1x32x128xf32> to vector<32x128xf32>
    %32 = vector.shape_cast %29 : vector<32x128xf32> to vector<1x1x32x128xf32>
    tpu.vector_store %arg7[%c0_19, %c0_20, %c0_21, %c0_22], %32 {strides = array<i32>} : memref<1x2x32x128xf32, #tpu.memory_space<vmem>>, vector<1x1x32x128xf32>,
    %c0_23 = arith.constant 0 : index
    %c1 = arith.constant 1 : index
    %c0_24 = arith.constant 0 : index
    %c0_25 = arith.constant 0 : index
    %33 = vector.load %arg7[%c0_23, %c1, %c0_24, %c0_25] : memref<1x2x32x128xf32, #tpu.memory_space<vmem>>, vector<1x1x32x128xf32>
    %34 = vector.shape_cast %33 : vector<1x1x32x128xf32> to vector<32x128xf32>
    %35 = vector.shape_cast %24 : vector<2x16x128xf32> to vector<1x32x128xf32>
    %cst_26 = arith.constant dense<0.000000e+00> : vector<32x128xf32>
    %36 = vector.multi_reduction <add>, %35, %cst_26 [0] : vector<1x32x128xf32> to vector<32x128xf32>
    %37 = arith.addf %34, %36 : vector<32x128xf32>
    %c0_27 = arith.constant 0 : index
    %c1_28 = arith.constant 1 : index
    %c0_29 = arith.constant 0 : index
    %c0_30 = arith.constant 0 : index
    %38 = vector.load %arg7[%c0_27, %c1_28, %c0_29, %c0_30] : memref<1x2x32x128xf32, #tpu.memory_space<vmem>>, vector<1x1x32x128xf32>
    %39 = vector.shape_cast %38 : vector<1x1x32x128xf32> to vector<32x128xf32>
    %40 = vector.shape_cast %37 : vector<32x128xf32> to vector<1x1x32x128xf32>
    tpu.vector_store %arg7[%c0_27, %c1_28, %c0_29, %c0_30], %40 {strides = array<i32>} : memref<1x2x32x128xf32, #tpu.memory_space<vmem>>, vector<1x1x32x128xf32>,
    return
  }
  func.func @transform_0(%arg0: i32, %arg1: i32, %arg2: i32) -> (i32, i32, i32, i32) {
    %c1_i32 = arith.constant 1 : i32
    %0 = arith.muli %arg0, %c1_i32 : i32
    %1 = arith.addi %0, %arg2 : i32
    %c0_i32 = arith.constant 0 : i32
    %c0_i32_0 = arith.constant 0 : i32
    %c0_i32_1 = arith.constant 0 : i32
    return %arg1, %c0_i32, %1, %c0_i32_0 : i32, i32, i32, i32
  }
  func.func @transform_1(%arg0: i32, %arg1: i32, %arg2: i32) -> (i32, i32, i32, i32) {
    %c1_i32 = arith.constant 1 : i32
    %0 = arith.muli %arg0, %c1_i32 : i32
    %1 = arith.addi %0, %arg2 : i32
    %c1_i32_0 = arith.constant 1 : i32
    %c0_i32 = arith.constant 0 : i32
    %c0_i32_1 = arith.constant 0 : i32
    return %arg1, %c1_i32_0, %1, %c0_i32 : i32, i32, i32, i32
  }
  func.func @transform_2(%arg0: i32, %arg1: i32, %arg2: i32) -> (i32, i32, i32) {
    %c1_i32 = arith.constant 1 : i32
    %0 = arith.muli %arg0, %c1_i32 : i32
    %1 = arith.addi %0, %arg2 : i32
    %c0_i32 = arith.constant 0 : i32
    %c0_i32_0 = arith.constant 0 : i32
    return %arg1, %1, %c0_i32 : i32, i32, i32
  }
  func.func @transform_3(%arg0: i32, %arg1: i32, %arg2: i32) -> (i32, i32, i32) {
    %c1_i32 = arith.constant 1 : i32
    %0 = arith.muli %arg0, %c1_i32 : i32
    %1 = arith.addi %0, %arg2 : i32
    %c0_i32 = arith.constant 0 : i32
    %c0_i32_0 = arith.constant 0 : i32
    return %arg1, %1, %c0_i32 : i32, i32, i32
  }
  func.func @transform_4(%arg0: i32, %arg1: i32, %arg2: i32) -> (i32, i32, i32, i32) {
    %c0_i32 = arith.constant 0 : i32
    %c0_i32_0 = arith.constant 0 : i32
    %c0_i32_1 = arith.constant 0 : i32
    %c0_i32_2 = arith.constant 0 : i32
    return %arg0, %c0_i32, %c0_i32_0, %c0_i32_1 : i32, i32, i32, i32
  }
}

</mosaic_0001>

<bundles_post_ra>
// kernel: pit_loss.1
= control target key start
LH: loop header
LB: loop body
LE: loop exit
PB: predicated region body
PF: predicated region fallthrough
CT: control target
= control target key end

     0   :  { %s406_s0 = inlined_call_operand.vmem [shape: f32[2,2,16,128], index: 0, kind: input, shape index: {}, may-alias: {0,1}]   ;;  %s407_s1 = inlined_call_operand.vmem [shape: f32[2,2,16,128], index: 1, kind: input, shape index: {}, may-alias: {0,1}]   ;;  %s408_s2 = inlined_call_operand.vmem [shape: f32[2,16,128], index: 2, kind: input, shape index: {}]   ;;  %s409_s3 = inlined_call_operand.vmem [shape: f32[2,16,128], index: 3, kind: input, shape index: {}]   ;;  %s410_s4 = inlined_call_operand.vmem [shape: f32[1,2,32,128], index: 4, kind: output, shape index: {}]  }
   0x1   :  { %v49_v0 = vld [vmem:[%s406_s0] sm:$0xff]  ;;  %v296_v1 = vld [vmem:[%s407_s1 + $0x10] sm:$0xff]  ;;  %v51_v5 = vld [vmem:[%s406_s0 + $0x8] sm:$0xff] }
   0x2   :  { %v190_v2 = vld [vmem:[%s408_s2] sm:$0xff]  ;;  %v297_v6 = vld [vmem:[%s407_s1 + $0x18] sm:$0xff]  ;;  %v191_v9 = vld [vmem:[%s408_s2 + $0x8] sm:$0xff] }
   0x3   :  { %v194_v3 = vld [vmem:[%s409_s3] sm:$0xff]  ;;  %v198_v4 = vsub.f32 %v49_v0, %v190_v2  ;;  %v226_v7 = vsub.f32 %v296_v1, %v190_v2  ;;  %v195_v10 = vld [vmem:[%s409_s3 + $0x8] sm:$0xff]  ;;  %v199_v14 = vsub.f32 %v51_v5, %v191_v9  ;;  %v298_v16 = vld [vmem:[%s407_s1 + $0x30] sm:$0xff]  ;;  %v227_v42 = vsub.f32 %v297_v6, %v191_v9 }
   0x4   :  { %v206_v8 = vsub.f32 %v296_v1, %v194_v3  ;;  %v53_v11 = vld [vmem:[%s406_s0 + $0x20] sm:$0xff]  ;;  %v218_v12 = vsub.f32 %v49_v0, %v194_v3  ;;  %v207_v15 = vsub.f32 %v297_v6, %v195_v10  ;;  %v192_v17 = vld [vmem:[%s408_s2 + $0x10] sm:$0xff]  ;;  %v55_v23 = vld [vmem:[%s406_s0 + $0x28] sm:$0xff]  ;;  %v219_v31 = vsub.f32 %v51_v5, %v195_v10 }
   0x5   :  { %v202_v13 = vmul.f32 %v198_v4, %v198_v4  ;;  %v196_v18 = vld [vmem:[%s409_s3 + $0x10] sm:$0xff]  ;;  %v230_v19 = vmul.f32 %v226_v7, %v226_v7  ;;  %v200_v21 = vsub.f32 %v53_v11, %v192_v17  ;;  %v299_v24 = vld [vmem:[%s407_s1 + $0x38] sm:$0xff]  ;;  %v203_v27 = vmul.f32 %v199_v14, %v199_v14 }
   0x6   :  { %v210_v20 = vmul.f32 %v206_v8, %v206_v8  ;;  %v208_v22 = vsub.f32 %v298_v16, %v196_v18  ;;  %v193_v25 = vld [vmem:[%s408_s2 + $0x18] sm:$0xff]  ;;  %v222_v26 = vmul.f32 %v218_v12, %v218_v12  ;;  %v211_v28 = vmul.f32 %v207_v15, %v207_v15 }
   0x7   :  { %v197_v29 = vld [vmem:[%s409_s3 + $0x18] sm:$0xff]  ;;  %v201_v30 = vsub.f32 %v55_v23, %v193_v25  ;;  %v204_v33 = vmul.f32 %v200_v21, %v200_v21  ;;  %v223_v39 = vmul.f32 %v219_v31, %v219_v31  ;;  %v220_v43 = vsub.f32 %v53_v11, %v196_v18 }
   0x8   :  { %v214_v32 = vadd.f32 %v210_v20, %v202_v13  ;;  %v212_v34 = vmul.f32 %v208_v22, %v208_v22  ;;  %v209_v35 = vsub.f32 %v299_v24, %v197_v29  ;;  %v215_v36 = vadd.f32 %v211_v28, %v203_v27 }
   0x9   :  { %v205_v37 = vmul.f32 %v201_v30, %v201_v30  ;;  %v234_v38 = vadd.f32 %v230_v19, %v222_v26  ;;  %v228_v44 = vsub.f32 %v298_v16, %v192_v17  ;;  %v231_v46 = vmul.f32 %v227_v42, %v227_v42 }
   0xa   :  { %v216_v40 = vadd.f32 %v212_v34, %v204_v33  ;;  %v213_v41 = vmul.f32 %v209_v35, %v209_v35  ;;  %250 = vst [vmem:[%s410_s4] sm:$0xff] %v214_v32  ;;  %v221_v47 = vsub.f32 %v55_v23, %v197_v29  ;;  %v224_v48 = vmul.f32 %v220_v43, %v220_v43 }
   0xb   :  { %251 = vst [vmem:[%s410_s4 + $0x8] sm:$0xff] %v215_v36  ;;  %v232_v49 = vmul.f32 %v228_v44, %v228_v44  ;;  %v229_v50 = vsub.f32 %v299_v24, %v193_v25  ;;  %v235_v51 = vadd.f32 %v231_v46, %v223_v39 }
   0xc   :  { %v217_v45 = vadd.f32 %v213_v41, %v205_v37  ;;  %252 = vst [vmem:[%s410_s4 + $0x10] sm:$0xff] %v216_v40  ;;  %v225_v52 = vmul.f32 %v221_v47, %v221_v47 }
   0xd   :  { %304 = vst [vmem:[%s410_s4 + $0x20] sm:$0xff] %v234_v38  ;;  %v236_v53 = vadd.f32 %v232_v49, %v224_v48  ;;  %v233_v54 = vmul.f32 %v229_v50, %v229_v50 }
   0xe   :  { %253 = vst [vmem:[%s410_s4 + $0x18] sm:$0xff] %v217_v45 }
   0xf   :  { %v237_v55 = vadd.f32 %v233_v54, %v225_v52  ;;  %305 = vst [vmem:[%s410_s4 + $0x28] sm:$0xff] %v235_v51 }
  0x10   :  { %306 = vst [vmem:[%s410_s4 + $0x30] sm:$0xff] %v236_v53 }
  0x11   :  { %307 = vst [vmem:[%s410_s4 + $0x38] sm:$0xff] %v237_v55 }

</bundles_post_ra>
